<compile_context>
chip_gen: v5e
topology: v5e:2x2
jax: 0.10.0
libtpu: 0.0.40
codegen_flags: <defaults>
</compile_context>

<pallas_src>
import functools

import jax
import jax.numpy as jnp
from jax.experimental import pallas as pl
from jax.experimental.pallas import tpu as pltpu


def _trojan_gcn_kernel(
    a_ref,              # (N, N)      bf16  raw 0/1 adjacency
    x_ref,              # (N, F)      f32   node features
    w1_ref, b1_ref,     # (F, 2F)     bf16, (1, 2F)  f32    conv1
    w2_ref, b2_ref,     # (2F, F)     bf16, (1, F)   f32    conv2
    wh_ref, bh_ref,     # (F, P)      bf16, (1, P)   f32    fused head layer 1 (lane-padded)
    wh2_ref, bh2_ref,   # (P, P)      bf16, (1, P)   f32    fused head layer 2 (block-diag, padded)
    out_ref,            # (N, P)      f32   [feat | edge_weight | zero padding]
):
    f32 = jnp.float32
    bf16 = jnp.bfloat16

    a = a_ref[...]                          # bf16 (0/1 values are exact)
    x = x_ref[...]                          # (N, F) f32

    # ---- symmetric normalization factors, computed in-kernel ---------------
    # XLU lane-reduce + EUP rsqrt: both units are otherwise idle here.
    deg = jnp.sum(a.astype(f32), axis=1, keepdims=True)       # (N, 1)
    deg = jnp.maximum(deg, 1.0)                                # DGL clamps deg >= 1
    dinv = jax.lax.rsqrt(deg)                                  # (N, 1) f32

    # ---- conv1:  (A_norm @ X) @ W1 + b1, relu -------------------------------
    #      A_norm @ X == dinv * (A @ (dinv * X))
    xs = (x * dinv).astype(bf16)                                       # (N, F)
    ax = jnp.dot(a, xs, preferred_element_type=f32) * dinv             # (N, F) f32
    h = jnp.dot(ax.astype(bf16), w1_ref[...],
                preferred_element_type=f32) + b1_ref[...]              # (N, 2F)
    h = jnp.maximum(h, 0.0)

    # ---- conv2:  A_norm @ (h @ W2) + b2, relu (contract to F first) ---------
    hw = jnp.dot(h.astype(bf16), w2_ref[...],
                 preferred_element_type=f32)                           # (N, F)
    hw = (hw * dinv).astype(bf16)
    h2 = jnp.dot(a, hw, preferred_element_type=f32) * dinv + b2_ref[...]
    h2 = jnp.maximum(h2, 0.0)                                          # (N, F)

    # ---- fused branch heads over ALL rows (trigger gather done in wrapper) --
    z = jnp.dot(h2.astype(bf16), wh_ref[...],
                preferred_element_type=f32) + bh_ref[...]              # (N, P)
    z = jnp.maximum(z, 0.0)
    out_ref[...] = jnp.dot(z.astype(bf16), wh2_ref[...],
                           preferred_element_type=f32) + bh2_ref[...]  # (N, P)


def prepare_trojan_params(params, input_dim, output_dim):
    """One-time parameter fusion / padding / dtype prep (outside the hot path).

    - GraphConv weights kept (in, out), cast to bf16.
    - The two branch heads are fused: layer-1 weights concatenated to
      (F, F+O), layer-2 weights block-diagonal (F+O, F+O).
    - The fused head dims are zero-padded up to a multiple of 128 lanes so the
      kernel's output stores are lane-dense.
    """
    f32 = jnp.float32
    bf16 = jnp.bfloat16
    fo = input_dim + output_dim
    fo_pad = max(128, ((fo + 127) // 128) * 128)

    def row(b, width):
        r = jnp.zeros((1, width), f32)
        return r.at[0, : b.shape[0]].set(b.astype(f32))

    # nn.Linear stores (out, in); transpose to (in, out) so kernel does x @ W.
    wh = jnp.zeros((input_dim, fo_pad), f32)
    wh = wh.at[:, :input_dim].set(params["wf"].T)
    wh = wh.at[:, input_dim:fo].set(params["we"].T)

    wh2 = jnp.zeros((fo_pad, fo_pad), f32)
    wh2 = wh2.at[:input_dim, :input_dim].set(params["wf1"].T)
    wh2 = wh2.at[input_dim:fo, input_dim:fo].set(params["we1"].T)

    bh = jnp.concatenate([params["bf"], params["be"]])
    bh2 = jnp.concatenate([params["bf1"], params["be1"]])

    fused = {
        "w1": params["w1"].astype(bf16),
        "b1": params["b1"].reshape(1, -1).astype(f32),
        "w2": params["w2"].astype(bf16),
        "b2": params["b2"].reshape(1, -1).astype(f32),
        "wh": wh.astype(bf16),
        "bh": row(bh, fo_pad),
        "wh2": wh2.astype(bf16),
        "bh2": row(bh2, fo_pad),
    }
    # Materialize on device once.
    return jax.tree_util.tree_map(jnp.asarray, fused)


@functools.partial(jax.jit, static_argnames=("out_dim",))
def trojan_gcn_forward(adj, features, trigger_nodes, fused, out_dim):
    """Fused Trojan_GCN forward: one Pallas kernel + trivial wrapper gather."""
    n_nodes, in_dim = features.shape
    fo_pad = fused["wh"].shape[1]
    f32 = jnp.float32
    bf16 = jnp.bfloat16

    # Advisory cost estimate so XLA schedules around the custom call.
    flops = int(
        2 * n_nodes * n_nodes * in_dim            # A @ (dinv*X)
        + 2 * n_nodes * in_dim * (2 * in_dim)     # (..) @ W1
        + 2 * n_nodes * (2 * in_dim) * in_dim     # h @ W2
        + 2 * n_nodes * n_nodes * in_dim          # A @ (..)
        + 2 * n_nodes * in_dim * fo_pad           # h2 @ Wh
        + 2 * n_nodes * fo_pad * fo_pad           # z @ Wh2
    )
    bytes_accessed = int(
        n_nodes * n_nodes * 2
        + n_nodes * in_dim * 4
        + (in_dim * 2 * in_dim + 2 * in_dim * in_dim
           + in_dim * fo_pad + fo_pad * fo_pad) * 2
        + (2 * in_dim + in_dim + 2 * fo_pad) * 4
        + n_nodes * fo_pad * 4
    )

    vmem = pltpu.MemorySpace.VMEM
    out = pl.pallas_call(
        _trojan_gcn_kernel,
        out_shape=jax.ShapeDtypeStruct((n_nodes, fo_pad), f32),
        in_specs=[pl.BlockSpec(memory_space=vmem)] * 10,
        out_specs=pl.BlockSpec(memory_space=vmem),
        cost_estimate=pl.CostEstimate(
            flops=flops, transcendentals=n_nodes, bytes_accessed=bytes_accessed
        ),
    )(
        adj.astype(bf16),             # raw 0/1 adjacency, exact in bf16
        features.astype(f32),
        fused["w1"], fused["b1"],
        fused["w2"], fused["b2"],
        fused["wh"], fused["bh"],
        fused["wh2"], fused["bh2"],
    )

    ht = out[trigger_nodes]           # trigger-row gather in the wrapper
    feat = ht[:, :in_dim]
    edge_weight = ht[:, in_dim:in_dim + out_dim]
    return feat, edge_weight


def init_params(key, input_dim, output_dim):
    """Deterministic synthetic parameters matching Trojan_GCN.__init__ shapes."""
    if output_dim < 3:
        output_dim = 3
    ks = jax.random.split(key, 12)
    sc = 0.1
    p = {
        # GraphConv weights stored as (in, out) like DGL
        "w1": sc * jax.random.normal(ks[0], (input_dim, 2 * input_dim), jnp.float32),
        "b1": sc * jax.random.normal(ks[1], (2 * input_dim,), jnp.float32),
        "w2": sc * jax.random.normal(ks[2], (2 * input_dim, input_dim), jnp.float32),
        "b2": sc * jax.random.normal(ks[3], (input_dim,), jnp.float32),
        # nn.Linear weights stored as (out, in) like PyTorch
        "wf": sc * jax.random.normal(ks[4], (input_dim, input_dim), jnp.float32),
        "bf": sc * jax.random.normal(ks[5], (input_dim,), jnp.float32),
        "wf1": sc * jax.random.normal(ks[6], (input_dim, input_dim), jnp.float32),
        "bf1": sc * jax.random.normal(ks[7], (input_dim,), jnp.float32),
        "we": sc * jax.random.normal(ks[8], (output_dim, input_dim), jnp.float32),
        "be": sc * jax.random.normal(ks[9], (output_dim,), jnp.float32),
        "we1": sc * jax.random.normal(ks[10], (output_dim, output_dim), jnp.float32),
        "be1": sc * jax.random.normal(ks[11], (output_dim,), jnp.float32),
    }
    return p, output_dim


if __name__ == "__main__":
    key = jax.random.PRNGKey(0)
    k_adj, k_param = jax.random.split(key)

    N_NODES = 16
    INPUT_DIM = 32
    OUTPUT_DIM = 8
    N_TRIGGER = 4

    # deterministic random undirected graph with self loops
    upper = (jax.random.uniform(k_adj, (N_NODES, N_NODES)) > 0.7).astype(jnp.float32)
    adj = jnp.clip(upper + upper.T + jnp.eye(N_NODES, dtype=jnp.float32), 0.0, 1.0)

    features = jax.random.normal(
        jax.random.PRNGKey(1), (N_NODES, INPUT_DIM), jnp.float32
    )
    trigger_nodes = jnp.array([1, 3, 5, 7], dtype=jnp.int32)

    params, out_dim = init_params(k_param, INPUT_DIM, OUTPUT_DIM)

    # One-time parameter fusion/padding (hoisted out of the forward path).
    fused = prepare_trojan_params(params, INPUT_DIM, out_dim)
    jax.block_until_ready(fused)

    feat, edge_weight = trojan_gcn_forward(
        adj, features, trigger_nodes, fused, out_dim=out_dim
    )
    jax.block_until_ready((feat, edge_weight))

    assert feat.shape == (N_TRIGGER, INPUT_DIM)
    assert edge_weight.shape == (N_TRIGGER, out_dim)

    # pure-JAX f32 reference check (kernel uses bf16 MXU inputs -> loose tol)
    deg = jnp.clip(adj.sum(1), 1.0, None)
    dinv = deg ** -0.5
    a_n = adj * dinv[:, None] * dinv[None, :]
    h = jnp.maximum(a_n @ (features @ params["w1"]) + params["b1"], 0.0)
    h = jnp.maximum(a_n @ (h @ params["w2"]) + params["b2"], 0.0)
    ht = h[trigger_nodes]
    feat_ref = (
        jnp.maximum(ht @ params["wf"].T + params["bf"], 0.0) @ params["wf1"].T
        + params["bf1"]
    )
    ew_ref = (
        jnp.maximum(ht @ params["we"].T + params["be"], 0.0) @ params["we1"].T
        + params["be1"]
    )
    assert jnp.allclose(feat, feat_ref, atol=5e-2, rtol=5e-2)
    assert jnp.allclose(edge_weight, ew_ref, atol=5e-2, rtol=5e-2)

    print("KERNEL_OK")
</pallas_src>

<mosaic_0001>
module attributes {stable_mosaic.version = 11 : i64} {
  func.func @_trojan_gcn_kernel(%arg0: memref<16x16xbf16, #tpu.memory_space<vmem>>, %arg1: memref<16x32xf32, #tpu.memory_space<vmem>>, %arg2: memref<32x64xbf16, #tpu.memory_space<vmem>>, %arg3: memref<1x64xf32, #tpu.memory_space<vmem>>, %arg4: memref<64x32xbf16, #tpu.memory_space<vmem>>, %arg5: memref<1x32xf32, #tpu.memory_space<vmem>>, %arg6: memref<32x128xbf16, #tpu.memory_space<vmem>>, %arg7: memref<1x128xf32, #tpu.memory_space<vmem>>, %arg8: memref<128x128xbf16, #tpu.memory_space<vmem>>, %arg9: memref<1x128xf32, #tpu.memory_space<vmem>>, %arg10: memref<16x128xf32, #tpu.memory_space<vmem>>) attributes {dimension_semantics = [], scalar_prefetch = 0 : i64, scratch_operands = 0 : i64, tpu.core_type = #tpu.core_type<tc>} {
    %c0 = arith.constant 0 : index
    %c0_0 = arith.constant 0 : index
    %0 = vector.load %arg0[%c0, %c0_0] : memref<16x16xbf16, #tpu.memory_space<vmem>>, vector<16x16xbf16>
    %c0_1 = arith.constant 0 : index
    %c0_2 = arith.constant 0 : index
    %1 = vector.load %arg1[%c0_1, %c0_2] : memref<16x32xf32, #tpu.memory_space<vmem>>, vector<16x32xf32>
    %2 = arith.extf %0 : vector<16x16xbf16> to vector<16x16xf32>
    %cst = arith.constant dense<0.000000e+00> : vector<16xf32>
    %3 = vector.multi_reduction <add>, %2, %cst [1] : vector<16x16xf32> to vector<16xf32>
    %4 = vector.shape_cast %3 : vector<16xf32> to vector<16x1xf32>
    %cst_3 = arith.constant 1.000000e+00 : f32
    %5 = vector.broadcast %cst_3 : f32 to vector<16x1xf32>
    %6 = arith.maximumf %4, %5 : vector<16x1xf32>
    %7 = math.rsqrt %6 : vector<16x1xf32>
    %8 = vector.broadcast %7 : vector<16x1xf32> to vector<16x32xf32>
    %9 = arith.mulf %1, %8 : vector<16x32xf32>
    %10 = arith.truncf %9 : vector<16x32xf32> to vector<16x32xbf16>
    %cst_4 = arith.constant dense<0.000000e+00> : vector<16x32xf32>
    %11 = tpu.matmul %0, %10, %cst_4 {dimension_numbers = #tpu.dot_dimension_numbers<[1], [0], [0], [1], [0, 0, 1, 1], [], []>} : vector<16x16xbf16>, vector<16x32xbf16>, vector<16x32xf32> -> vector<16x32xf32>
    %12 = vector.broadcast %7 : vector<16x1xf32> to vector<16x32xf32>
    %13 = arith.mulf %11, %12 : vector<16x32xf32>
    %14 = arith.truncf %13 : vector<16x32xf32> to vector<16x32xbf16>
    %c0_5 = arith.constant 0 : index
    %c0_6 = arith.constant 0 : index
    %15 = vector.load %arg2[%c0_5, %c0_6] : memref<32x64xbf16, #tpu.memory_space<vmem>>, vector<32x64xbf16>
    %cst_7 = arith.constant dense<0.000000e+00> : vector<16x64xf32>
    %16 = tpu.matmul %14, %15, %cst_7 {dimension_numbers = #tpu.dot_dimension_numbers<[1], [0], [0], [1], [0, 0, 1, 1], [], []>} : vector<16x32xbf16>, vector<32x64xbf16>, vector<16x64xf32> -> vector<16x64xf32>
    %c0_8 = arith.constant 0 : index
    %c0_9 = arith.constant 0 : index
    %17 = vector.load %arg3[%c0_8, %c0_9] : memref<1x64xf32, #tpu.memory_space<vmem>>, vector<1x64xf32>
    %18 = vector.broadcast %17 : vector<1x64xf32> to vector<16x64xf32>
    %19 = arith.addf %16, %18 : vector<16x64xf32>
    %cst_10 = arith.constant 0.000000e+00 : f32
    %20 = vector.broadcast %cst_10 : f32 to vector<16x64xf32>
    %21 = arith.maximumf %19, %20 : vector<16x64xf32>
    %22 = arith.truncf %21 : vector<16x64xf32> to vector<16x64xbf16>
    %c0_11 = arith.constant 0 : index
    %c0_12 = arith.constant 0 : index
    %23 = vector.load %arg4[%c0_11, %c0_12] : memref<64x32xbf16, #tpu.memory_space<vmem>>, vector<64x32xbf16>
    %cst_13 = arith.constant dense<0.000000e+00> : vector<16x32xf32>
    %24 = tpu.matmul %22, %23, %cst_13 {dimension_numbers = #tpu.dot_dimension_numbers<[1], [0], [0], [1], [0, 0, 1, 1], [], []>} : vector<16x64xbf16>, vector<64x32xbf16>, vector<16x32xf32> -> vector<16x32xf32>
    %25 = vector.broadcast %7 : vector<16x1xf32> to vector<16x32xf32>
    %26 = arith.mulf %24, %25 : vector<16x32xf32>
    %27 = arith.truncf %26 : vector<16x32xf32> to vector<16x32xbf16>
    %cst_14 = arith.constant dense<0.000000e+00> : vector<16x32xf32>
    %28 = tpu.matmul %0, %27, %cst_14 {dimension_numbers = #tpu.dot_dimension_numbers<[1], [0], [0], [1], [0, 0, 1, 1], [], []>} : vector<16x16xbf16>, vector<16x32xbf16>, vector<16x32xf32> -> vector<16x32xf32>
    %29 = vector.broadcast %7 : vector<16x1xf32> to vector<16x32xf32>
    %30 = arith.mulf %28, %29 : vector<16x32xf32>
    %c0_15 = arith.constant 0 : index
    %c0_16 = arith.constant 0 : index
    %31 = vector.load %arg5[%c0_15, %c0_16] : memref<1x32xf32, #tpu.memory_space<vmem>>, vector<1x32xf32>
    %32 = vector.broadcast %31 : vector<1x32xf32> to vector<16x32xf32>
    %33 = arith.addf %30, %32 : vector<16x32xf32>
    %cst_17 = arith.constant 0.000000e+00 : f32
    %34 = vector.broadcast %cst_17 : f32 to vector<16x32xf32>
    %35 = arith.maximumf %33, %34 : vector<16x32xf32>
    %36 = arith.truncf %35 : vector<16x32xf32> to vector<16x32xbf16>
    %c0_18 = arith.constant 0 : index
    %c0_19 = arith.constant 0 : index
    %37 = vector.load %arg6[%c0_18, %c0_19] : memref<32x128xbf16, #tpu.memory_space<vmem>>, vector<32x128xbf16>
    %cst_20 = arith.constant dense<0.000000e+00> : vector<16x128xf32>
    %38 = tpu.matmul %36, %37, %cst_20 {dimension_numbers = #tpu.dot_dimension_numbers<[1], [0], [0], [1], [0, 0, 1, 1], [], []>} : vector<16x32xbf16>, vector<32x128xbf16>, vector<16x128xf32> -> vector<16x128xf32>
    %c0_21 = arith.constant 0 : index
    %c0_22 = arith.constant 0 : index
    %39 = vector.load %arg7[%c0_21, %c0_22] : memref<1x128xf32, #tpu.memory_space<vmem>>, vector<1x128xf32>
    %40 = vector.broadcast %39 : vector<1x128xf32> to vector<16x128xf32>
    %41 = arith.addf %38, %40 : vector<16x128xf32>
    %cst_23 = arith.constant 0.000000e+00 : f32
    %42 = vector.broadcast %cst_23 : f32 to vector<16x128xf32>
    %43 = arith.maximumf %41, %42 : vector<16x128xf32>
    %44 = arith.truncf %43 : vector<16x128xf32> to vector<16x128xbf16>
    %c0_24 = arith.constant 0 : index
    %c0_25 = arith.constant 0 : index
    %45 = vector.load %arg8[%c0_24, %c0_25] : memref<128x128xbf16, #tpu.memory_space<vmem>>, vector<128x128xbf16>
    %cst_26 = arith.constant dense<0.000000e+00> : vector<16x128xf32>
    %46 = tpu.matmul %44, %45, %cst_26 {dimension_numbers = #tpu.dot_dimension_numbers<[1], [0], [0], [1], [0, 0, 1, 1], [], []>} : vector<16x128xbf16>, vector<128x128xbf16>, vector<16x128xf32> -> vector<16x128xf32>
    %c0_27 = arith.constant 0 : index
    %c0_28 = arith.constant 0 : index
    %47 = vector.load %arg9[%c0_27, %c0_28] : memref<1x128xf32, #tpu.memory_space<vmem>>, vector<1x128xf32>
    %48 = vector.broadcast %47 : vector<1x128xf32> to vector<16x128xf32>
    %49 = arith.addf %46, %48 : vector<16x128xf32>
    %c0_29 = arith.constant 0 : index
    %c0_30 = arith.constant 0 : index
    %50 = vector.load %arg10[%c0_29, %c0_30] : memref<16x128xf32, #tpu.memory_space<vmem>>, vector<16x128xf32>
    tpu.vector_store %arg10[%c0_29, %c0_30], %49 {strides = array<i32>} : memref<16x128xf32, #tpu.memory_space<vmem>>, vector<16x128xf32>,
    return
  }
}

</mosaic_0001>

<bundles_post_ra>
// kernel: trojan_gcn_forward.1
= control target key start
LH: loop header
LB: loop body
LE: loop exit
PB: predicated region body
PF: predicated region fallthrough
CT: control target
= control target key end

     0   :  { %15 = vsyncpa [#allocation3], 0  ;;  %s883_s0 = inlined_call_operand.vmem [shape: bf16[16,16], index: 0, kind: input, shape index: {}]   ;;  %s884_s1 = inlined_call_operand.hbm [shape: f32[16,32], index: 1, kind: input, shape index: {}]   ;;  %s885_s2 = inlined_call_operand.hbm [shape: bf16[32,64], index: 2, kind: input, shape index: {}]   ;;  %s886_s3 = inlined_call_operand.hbm [shape: f32[1,64], index: 3, kind: input, shape index: {}]   ;;  %s887_s4 = inlined_call_operand.vmem [shape: bf16[64,32], index: 4, kind: input, shape index: {}]   ;;  %s888_s5 = inlined_call_operand.hbm [shape: f32[1,32], index: 5, kind: input, shape index: {}]   ;;  %s889_s6 = inlined_call_operand.hbm [shape: bf16[32,128], index: 6, kind: input, shape index: {}]   ;;  %s890_s7 = inlined_call_operand.hbm [shape: f32[1,128], index: 7, kind: input, shape index: {}]   ;;  %s891_s8 = inlined_call_operand.vmem [shape: bf16[128,128], index: 8, kind: input, shape index: {}]   ;;  %s892_s9 = inlined_call_operand.hbm [shape: f32[1,128], index: 9, kind: input, shape index: {}]   ;;  %s893_s10 = inlined_call_operand.vmem [shape: f32[16,128], index: 10, kind: output, shape index: {}]  }
   0x1   :  { %16 = vsyncpa [#allocation5], 0 }
   0x2   :  { %17 = vsyncpa [#allocation8], 0  ;;  %s38_s15 = sshll.u32 %s885_s2, 4  ;;  %s39_s15 = int_to_ptr.hbm [resolvable:$true] %s38_s15 }
   0x3   :  { %18 = vsyncpa [#allocation11], 0  ;;  %s736_s16 = smov [#allocation4]   ;;  %s65_s20 = sshll.u32 %s888_s5, 4  ;;  %s66_s20 = int_to_ptr.hbm [resolvable:$true] %s65_s20 }
   0x4   :  { %s40_s17 = sshll.u32 %s736_s16, 4  ;;  %s737_s21 = smov 64   ;;  %s41_s17 = int_to_ptr.vmem [resolvable:$true] %s40_s17 }
   0x5   :  { %s738_s22 = smov 4   ;;  %s739_s23 = smov [#allocation7]  }
   0x6   :  { %46 = dma.hbm_to_vmem [thread:$0]  %s39_s15, 256, %s41_s17, [#allocation5], %s737_s21, %s737_s21, %s738_s22  }
   0x7   :  { %s67_s24 = sshll.u32 %s739_s23, 4  ;;  %s89_s26 = sshll.u32 %s890_s7, 4  ;;  %s68_s24 = int_to_ptr.vmem [resolvable:$true] %s67_s24  ;;  %s90_s26 = int_to_ptr.hbm [resolvable:$true] %s89_s26 }
   0x8   :  { %70 = dma.hbm_to_vmem [thread:$0]  %s66_s20, 16, %s68_s24, [#allocation8]  }
   0x9   :  { %s25_s5 = sshll.u32 %s884_s1, 4  ;;  %s740_s29 = smov [#allocation10]   ;;  %s26_s5 = int_to_ptr.hbm [resolvable:$true] %s25_s5 }
   0xa   :  { %s91_s30 = sshll.u32 %s740_s29, 4  ;;  %s741_s11 = smov [#allocation2]   ;;  %s92_s30 = int_to_ptr.vmem [resolvable:$true] %s91_s30 }
   0xb   :  { %94 = dma.hbm_to_vmem [thread:$0]  %s90_s26, 16, %s92_s30, [#allocation11]  }
   0xc   :  { %s27_s12 = sshll.u32 %s741_s11, 4  ;;  %s742_s13 = smov 128   ;;  %s28_s12 = int_to_ptr.vmem [resolvable:$true] %s27_s12 }
   0xd   :  { %s743_s14 = smov 8   ;;  %s52_s16 = sshll.u32 %s886_s3, 4  ;;  %s53_s16 = int_to_ptr.hbm [resolvable:$true] %s52_s16 }
   0xe   :  { %33 = dma.hbm_to_vmem [thread:$0]  %s26_s5, 256, %s28_s12, [#allocation3], %s742_s13, %s742_s13, %s743_s14  }
   0xf   :  { %s744_s17 = smov [#allocation6]   ;;  %s75_s20 = sshll.u32 %s889_s6, 4  ;;  %s76_s20 = int_to_ptr.hbm [resolvable:$true] %s75_s20 }
  0x10   :  { %s54_s18 = sshll.u32 %s744_s17, 4  ;;  %s745_s23 = smov [#allocation9]   ;;  %s55_s18 = int_to_ptr.vmem [resolvable:$true] %s54_s18 }
  0x11   :  { %57 = dma.hbm_to_vmem [thread:$0]  %s53_s16, 16, %s55_s18, [#allocation5]  }
  0x12   :  { %s77_s24 = sshll.u32 %s745_s23, 4  ;;  %s102_s26 = sshll.u32 %s892_s9, 4  ;;  %s78_s24 = int_to_ptr.vmem [resolvable:$true] %s77_s24  ;;  %s103_s26 = int_to_ptr.hbm [resolvable:$true] %s102_s26 }
  0x13   :  { %83 = dma.hbm_to_vmem [thread:$0]  %s76_s20, 256, %s78_s24, [#allocation8], %s737_s21, %s737_s21, %s738_s22  }
  0x14   :  { %s746_s3 = smov [#allocation12]  }
  0x15   :  { %s104_s27 = sshll.u32 %s746_s3, 4  ;;  %s105_s27 = int_to_ptr.vmem [resolvable:$true] %s104_s27 }
  0x16   :  { %107 = dma.hbm_to_vmem [thread:$0]  %s103_s26, 16, %s105_s27, [#allocation11]  }
  0x17   :  { %728 = dma.done.wait [#allocation3], 256  }
  0x18   :  { %729 = vsyncadd [#allocation3], 4294967040 }
  0x19   :  { %730 = dma.done.wait [#allocation5], 272  }
  0x1a   :  { %731 = vsyncadd [#allocation5], 4294967024 }
  0x1b   :  { %732 = dma.done.wait [#allocation8], 272  }
  0x1c   :  { %733 = vsyncadd [#allocation8], 4294967024 }
  0x1d   :  { %734 = dma.done.wait [#allocation11], 32  }
  0x1e   :  { %735 = vsyncadd [#allocation11], 4294967264  ;;  %v137_v0 = vld [vmem:[%s883_s0] sm:$0xff]   ;;  %vm143_vm0 = vcmask 130048   ;;  %v140_v22 = vld [vmem:[#allocation2 + $0x8] sm:$0xff]  ;;  %vm220_vm7 = vcmask 261120  }
  0x1f   :  { %v141_v1 = vunpack.c.l.bf16 %v137_v0  ;;  %v142_v3 = vunpack.c.h.bf16 %v137_v0  ;;  %v139_v21 = vld [vmem:[#allocation2] sm:$0xff]  ;;  %v526_v29 = vld [vmem:[#allocation4 + $0x8] sm:$0xff]  ;;  %v525_v30 = vld [vmem:[#allocation4] sm:$0xff]  ;;  %vm273_vm8 = vcmask 523264  }
  0x20   :  { %v524_v28 = vld [vmem:[%s883_s0] sm:$0xff]  ;;  %230 = vmatpush.bf16.msra.mxu1 %v526_v29  ;;  %v530_v36 = vld [vmem:[%s887_s4 + $0x18] sm:$0xff]  ;;  %v529_v37 = vld [vmem:[%s887_s4 + $0x10] sm:$0xff] }
  0x21   :  { %v144_v2 = vsel %vm143_vm0, %v141_v1, 0.0  ;;  %v147_v4 = vsel %vm143_vm0, %v142_v3, 0.0  ;;  %281 = vmatpush.bf16.msra.mxu2 %v530_v36  ;;  %v528_v38 = vld [vmem:[%s887_s4 + $0x8] sm:$0xff]  ;;  %v527_v39 = vld [vmem:[%s887_s4] sm:$0xff]  ;;  %v540_v55 = vld [vmem:[%s891_s8 + $0x38] sm:$0xff] }
  0x22   :  { %145 = vadd.xlane.f32.xlu0 %v144_v2  ;;  %v552_v41 = vld [vmem:[#allocation6] ss:$0 sm:$0xff]  ;;  %v532_v53 = vld [vmem:[#allocation9 + $0x8] sm:$0xff]  ;;  %v531_v54 = vld [vmem:[#allocation9] sm:$0xff]  ;;  %427 = vmatpush.bf16.msra.mxu3 %v540_v55 }
  0x23   :  { %v539_v56 = vld [vmem:[%s891_s8 + $0x30] sm:$0xff]  ;;  %v538_v57 = vld [vmem:[%s891_s8 + $0x28] sm:$0xff]  ;;  %v537_v58 = vld [vmem:[%s891_s8 + $0x20] sm:$0xff] }
  0x24   :  { %231 = vmatpush.bf16.msra.mxu1 %v525_v30  ;;  %v553_v61 = vld [vmem:[#allocation7] ss:$0 sm:$0xff] }
  0x25   :  { %282 = vmatpush.bf16.msra.mxu2 %v529_v37 }
  0x26   :  { %428 = vmatpush.bf16.msra.mxu3 %v539_v56 }
  0x29   :  { %283 = vmatpush.bf16.msra.mxu2 %v528_v38 }
  0x2a   :  { %148 = vadd.xlane.f32.xlu0 %v147_v4  ;;  %429 = vmatpush.bf16.msra.mxu3 %v538_v57 }
  0x2d   :  { %284 = vmatpush.bf16.msra.mxu2 %v527_v39 }
  0x2e   :  { %430 = vmatpush.bf16.msra.mxu3 %v537_v58 }
  0x95   :  { %v146_v5 = vpop.xlane.xlu0 %145 }
  0x96   :  { %v150_v6 = vmax.f32 %v146_v5, 1.0  ;;  %v536_v5 = vld [vmem:[%s891_s8 + $0x18] sm:$0xff] }
  0x97   :  { %431 = vmatpush.bf16.msra.mxu3 %v536_v5 }
  0x98   :  { %556 = vrsqrt.f32 %v150_v6  ;;  %vm158_vm2 = vweird.f32 %v150_v6 }
  0x9d   :  { %v149_v7 = vpop.xlane.xlu0 %148 }
  0x9e   :  { %v557_v8 = vpop.eup %556  ;;  %v151_v9 = vmax.f32 %v149_v7, 1.0  ;;  %v534_v7 = vld [vmem:[%s891_s8 + $0x8] sm:$0xff] }
  0x9f   :  { %v153_v10 = vmul.f32 %v557_v8, %v150_v6  ;;  %vm159_vm1 = vweird.f32 %v557_v8  ;;  %v535_v6 = vld [vmem:[%s891_s8 + $0x10] sm:$0xff] }
  0xa0   :  { %558 = vrsqrt.f32 %v151_v9  ;;  %vm160_vm4 = vmor %vm158_vm2, %vm159_vm1  ;;  %vm168_vm5 = vweird.f32 %v151_v9  ;;  %432 = vmatpush.bf16.msra.mxu3 %v535_v6 }
  0xa1   :  { %v154_v11 = vmul.f32 %v557_v8, %v153_v10  ;;  %v554_v10 = vld [vmem:[#allocation10] ss:$0 sm:$0xff] }
  0xa3   :  { %v155_v12 = vmul.f32 0.5, %v154_v11 }
  0xa4   :  { %433 = vmatpush.bf16.msra.mxu3 %v534_v7 }
  0xa5   :  { %v156_v14 = vsub.f32 1.5, %v155_v12 }
  0xa6   :  { %v559_v13 = vpop.eup %558 }
  0xa7   :  { %v163_v15 = vmul.f32 %v559_v13, %v151_v9  ;;  %v157_v17 = vmul.f32 %v557_v8, %v156_v14  ;;  %vm169_vm3 = vweird.f32 %v559_v13 }
  0xa8   :  { %vm170_vm6 = vmor %vm168_vm5, %vm169_vm3 }
  0xa9   :  { %v164_v16 = vmul.f32 %v559_v13, %v163_v15  ;;  %v161_v23 = vsel %vm160_vm4, %v557_v8, %v157_v17  ;;  %v533_v8 = vld [vmem:[%s891_s8] sm:$0xff]  ;;  %v555_v17 = vld [vmem:[#allocation12] ss:$0 sm:$0xff] }
  0xaa   :  { %v172_v25 = vmul.f32 %v161_v23, %v139_v21  ;;  %434 = vmatpush.bf16.msra.mxu3 %v533_v8 }
  0xab   :  { %v165_v18 = vmul.f32 0.5, %v164_v16 }
  0xad   :  { %v166_v19 = vsub.f32 1.5, %v165_v18 }
  0xaf   :  { %v167_v20 = vmul.f32 %v559_v13, %v166_v19 }
  0xb1   :  { %v171_v24 = vsel %vm170_vm6, %v559_v13, %v167_v20 }
  0xb2   :  { %v173_v26 = vmul.f32 %v171_v24, %v140_v22 }
  0xb4   :  { %v174_v27 = vpack.c.bf16 %v173_v26, %v172_v25 }
  0xb6   :  { %190 = vmatpush.bf16.msra.mxu0 %v174_v27 }
  0xb9   :  { %455 = vmatmul.msk.bf16.vlgmr.msra.gmra.mxu0 %vm143_vm0, %v524_v28 }
  0xba   :  { %348 = vmatpush.bf16.msrb.mxu0 %v532_v53 }
  0xbe   :  { %349 = vmatpush.bf16.msrb.mxu0 %v531_v54 }
 0x136   :  { %v192_v31 = vpop.f32.mrf.mxu0 }
 0x137   :  { %v197_v33 = vmul.f32 %v192_v31, %v161_v23 }
 0x13e   :  { %v194_v32 = vpop.f32.mrf.mxu0 }
 0x13f   :  { %v198_v34 = vmul.f32 %v194_v32, %v171_v24 }
 0x141   :  { %v199_v35 = vpack.c.bf16 %v198_v34, %v197_v33 }
 0x143   :  { %464 = vmatmul.msk.bf16.vlgmr.msra.gmra.mxu1 %vm220_vm7, %v199_v35 }
 0x1c0   :  { %v233_v40 = vpop.f32.mrf.mxu1 }
 0x1c1   :  { %v234_v42 = vadd.f32 %v552_v41, %v233_v40 }
 0x1c3   :  { %v238_v45 = vmax.f32 %v234_v42, 0.0 }
 0x1c8   :  { %v235_v43 = vpop.f32.mrf.mxu1 }
 0x1c9   :  { %v236_v44 = vadd.f32 %v552_v41, %v235_v43 }
 0x1cb   :  { %v239_v46 = vmax.f32 %v236_v44, 0.0 }
 0x1cd   :  { %v240_v47 = vpack.c.bf16 %v239_v46, %v238_v45 }
 0x1cf   :  { %481 = vmatmul.msk.bf16.vlgmr.msra.gmra.mxu2 %vm273_vm8, %v240_v47 }
 0x252   :  { %v286_v48 = vpop.f32.mrf.mxu2 }
 0x253   :  { %v291_v50 = vmul.f32 %v286_v48, %v161_v23 }
 0x25a   :  { %v288_v49 = vpop.f32.mrf.mxu2 }
 0x25b   :  { %v292_v51 = vmul.f32 %v288_v49, %v171_v24 }
 0x25d   :  { %v293_v52 = vpack.c.bf16 %v292_v51, %v291_v50 }
 0x25f   :  { %301 = vmatpush.bf16.msrb.mxu1 %v293_v52 }
 0x262   :  { %482 = vmatmul.msk.bf16.vlgmr.msrb.gmra.mxu1 %vm143_vm0, %v524_v28 }
 0x2df   :  { %v303_v59 = vpop.f32.mrf.mxu1 }
 0x2e0   :  { %v308_v60 = vmul.f32 %v303_v59, %v161_v23 }
 0x2e2   :  { %v314_v63 = vadd.f32 %v553_v61, %v308_v60 }
 0x2e4   :  { %v316_v2 = vmax.f32 %v314_v63, 0.0 }
 0x2e7   :  { %v305_v62 = vpop.f32.mrf.mxu1 }
 0x2e8   :  { %v309_v0 = vmul.f32 %v305_v62, %v171_v24 }
 0x2ea   :  { %v315_v1 = vadd.f32 %v553_v61, %v309_v0 }
 0x2ec   :  { %v317_v3 = vmax.f32 %v315_v1, 0.0 }
 0x2ee   :  { %v318_v4 = vpack.c.bf16 %v317_v3, %v316_v2 }
 0x2f0   :  { %491 = vmatmul.msk.bf16.vlgmr.msrb.gmra.mxu0 %vm220_vm7, %v318_v4 }
 0x36d   :  { %v351_v9 = vpop.f32.mrf.mxu0 }
 0x36e   :  { %v352_v11 = vadd.f32 %v554_v10, %v351_v9 }
 0x370   :  { %v356_v14 = vmax.f32 %v352_v11, 0.0 }
 0x375   :  { %v353_v12 = vpop.f32.mrf.mxu0 }
 0x376   :  { %v354_v13 = vadd.f32 %v554_v10, %v353_v12 }
 0x378   :  { %v357_v15 = vmax.f32 %v354_v13, 0.0 }
 0x37a   :  { %v358_v16 = vpack.c.bf16 %v357_v15, %v356_v14 }
 0x37c   :  { %435 = vmatmul.bf16.vlgmr.msra.gmra.mxu3 %v358_v16 }
 0x3ff   :  { %v436_v18 = vpop.f32.mrf.mxu3 }
 0x400   :  { %v437_v19 = vadd.f32 %v555_v17, %v436_v18 }
 0x402   :  { %441 = vst [vmem:[%s893_s10] sm:$0xff] %v437_v19 }
 0x407   :  { %v438_v20 = vpop.f32.mrf.mxu3 }
 0x408   :  { %v439_v21 = vadd.f32 %v555_v17, %v438_v20 }
 0x40a   :  { %442 = vst [vmem:[%s893_s10 + $0x8] sm:$0xff] %v439_v21 }
 0x40b   :  { %447 = vsyncpa [#allocation3], 1 }
 0x40c   :  { %448 = vsyncpa [#allocation5], 1 }
 0x40d   :  { %449 = vsyncpa [#allocation8], 1 }
 0x40e   :  { %450 = vsyncpa [#allocation11], 1 }

</bundles_post_ra>
